<compile_context>
chip_gen: v5e
topology: v5e:2x2
jax: 0.10.0
libtpu: 0.0.40
codegen_flags: <defaults>
</compile_context>

<pallas_src>
import functools

import jax
import jax.numpy as jnp
import numpy as np
from jax.experimental import pallas as pl
from jax.experimental.pallas import tpu as pltpu


def _round_up(a, b):
    return ((a + b - 1) // b) * b


def _vmem_limit_bytes():
    # v7x: 64 MiB / TC; v5e / v6e: 128 MiB.  Keep headroom for the compiler.
    try:
        cap = pltpu.get_tpu_info().vmem_capacity_bytes
    except Exception:
        cap = 64 * 1024 * 1024
    return int(min(cap * 3 // 4, 112 * 1024 * 1024))


# ---------------------------------------------------------------------------
# Stage 1: xw = x @ W   (one MXU matmul per (row-tile, col-tile))
# ---------------------------------------------------------------------------
def _xw_kernel(x_ref, w_ref, xw_ref, *, precision):
    xw_ref[...] = jnp.dot(
        x_ref[...], w_ref[...],
        preferred_element_type=jnp.float32,
        precision=precision,
    ).astype(xw_ref.dtype)


# ---------------------------------------------------------------------------
# Stage 2: out = ReLU(adj @ xw)
#   K-tiled matmul accumulating directly into the (resident) output block.
# ---------------------------------------------------------------------------
def _stage2_kernel(adj_ref, xw_ref, out_ref, *, tk, xw_resident, precision):
    k = pl.program_id(2)

    if xw_resident:
        # xw_ref holds the full (N_pad, tn) column slab; slice out this K tile.
        off = pl.multiple_of(k * tk, tk)
        xw_tile = xw_ref[pl.ds(off, tk), :]
    else:
        xw_tile = xw_ref[...]

    part = jnp.dot(
        adj_ref[...], xw_tile,
        preferred_element_type=jnp.float32,
        precision=precision,
    )

    @pl.when(k == 0)
    def _():
        out_ref[...] = part

    @pl.when(k > 0)
    def _():
        out_ref[...] += part

    @pl.when(k == pl.num_programs(2) - 1)
    def _():
        out_ref[...] = jnp.maximum(out_ref[...], 0.0)


# ---------------------------------------------------------------------------
# Wrapper
# ---------------------------------------------------------------------------
def graph_conv_sparse(x, weight, adj, *, tm=512, tn=None, tk=2048,
                      use_bf16=False,
                      xw_resident_max_bytes=8 * 1024 * 1024):
    """ReLU(adj @ (x @ weight)) via two Pallas TPU kernels."""
    N, d_in = x.shape
    d_in_w, d_out = weight.shape
    assert d_in == d_in_w
    assert adj.shape == (N, N)

    f32 = jnp.float32
    compute_dtype = jnp.bfloat16 if use_bf16 else f32
    itemsize = jnp.dtype(compute_dtype).itemsize
    # Keep the f32 path truly ~f32 on bf16-MXU chips; bf16 path uses one pass.
    f32_precision = jax.lax.Precision.HIGHEST
    stage2_precision = jax.lax.Precision.DEFAULT if use_bf16 else f32_precision
    vmem_limit = _vmem_limit_bytes()

    # ---- tile / padding bookkeeping -------------------------------------
    # Lane-dense output: last dim a multiple of 128.
    d_out_pad = _round_up(d_out, 128)
    if tn is None:
        if d_out_pad <= 512:
            tn = d_out_pad
        else:
            tn = next(t for t in (512, 384, 256, 128) if d_out_pad % t == 0)
    assert d_out_pad % tn == 0

    N_pad = _round_up(N, 128)
    # Row tile: largest candidate (user value first) that divides N_pad.
    tm = next(t for t in (tm, 512, 384, 256, 128)
              if t % 128 == 0 and t <= N_pad and N_pad % t == 0)
    # Keep >= 2 row tiles when possible (megacore row split on v7x).
    while N_pad // tm < 2 and tm >= 256 and tm % 256 == 0:
        tm //= 2
    # Contraction tile.
    tk = next(t for t in (tk, 4096, 2048, 1024, 512, 256, 128)
              if t % 128 == 0 and t <= N_pad and N_pad % t == 0)

    pad_n = N_pad - N
    pad_d = d_out_pad - d_out

    # ---- operand prep (pads only when needed; adj cast fused with pad) ---
    x_p = x.astype(f32)
    if pad_n:
        x_p = jnp.pad(x_p, ((0, pad_n), (0, 0)))
    w_p = weight.astype(f32)
    if pad_d:
        w_p = jnp.pad(w_p, ((0, 0), (0, pad_d)))
    adj_c = adj if adj.dtype == compute_dtype else adj.astype(compute_dtype)
    if pad_n:
        adj_c = jnp.pad(adj_c, ((0, pad_n), (0, pad_n)))

    # ---- stage 1: xw = x @ W  (emitted directly in compute_dtype) --------
    xw = pl.pallas_call(
        functools.partial(_xw_kernel, precision=f32_precision),
        out_shape=jax.ShapeDtypeStruct((N_pad, d_out_pad), compute_dtype),
        grid_spec=pltpu.PrefetchScalarGridSpec(
            num_scalar_prefetch=0,
            grid=(N_pad // tm, d_out_pad // tn),
            in_specs=[
                pl.BlockSpec((tm, d_in), lambda i, j: (i, 0)),
                pl.BlockSpec((d_in, tn), lambda i, j: (0, j)),
            ],
            out_specs=pl.BlockSpec((tm, tn), lambda i, j: (i, j)),
        ),
        compiler_params=pltpu.CompilerParams(
            dimension_semantics=("parallel", "parallel"),
            vmem_limit_bytes=vmem_limit,
        ),
    )(x_p, w_p)

    # ---- stage 2: out = ReLU(adj @ xw) ------------------------------------
    xw_resident = (N_pad * tn * itemsize) <= xw_resident_max_bytes
    if xw_resident:
        # Full-K column slab, constant block index along i/k -> fetched once,
        # stays resident in VMEM for the whole row sweep.
        xw_spec = pl.BlockSpec((N_pad, tn), lambda i, j, k: (0, j))
        xw_reads = 1
    else:
        xw_spec = pl.BlockSpec((tk, tn), lambda i, j, k: (k, j))
        xw_reads = N_pad // tm

    cost = pl.CostEstimate(
        flops=2 * N_pad * N_pad * d_out_pad,
        transcendentals=0,
        bytes_accessed=(
            N_pad * N_pad * itemsize                       # adj (once)
            + xw_reads * N_pad * d_out_pad * itemsize      # xw
            + N_pad * d_out_pad * 4                        # out (f32)
        ),
    )

    out_p = pl.pallas_call(
        functools.partial(_stage2_kernel, tk=tk, xw_resident=xw_resident,
                          precision=stage2_precision),
        out_shape=jax.ShapeDtypeStruct((N_pad, d_out_pad), f32),
        grid_spec=pltpu.PrefetchScalarGridSpec(
            num_scalar_prefetch=0,
            grid=(N_pad // tm, d_out_pad // tn, N_pad // tk),  # reduction last
            in_specs=[
                pl.BlockSpec((tm, tk), lambda i, j, k: (i, k)),
                xw_spec,
            ],
            out_specs=pl.BlockSpec((tm, tn), lambda i, j, k: (i, j)),
        ),
        compiler_params=pltpu.CompilerParams(
            # row/col axes independent -> parallel (2-TC sharding on v7x);
            # contraction axis carries the resident output block -> arbitrary.
            dimension_semantics=("parallel", "parallel", "arbitrary"),
            vmem_limit_bytes=vmem_limit,
        ),
        cost_estimate=cost,
    )(adj_c, xw)

    if pad_n or pad_d:
        return out_p[:N, :d_out]
    return out_p


# ---------------------------------------------------------------------------
# Init, references & test
# ---------------------------------------------------------------------------
def glorot_init(key, input_dim, output_dim):
    init_range = np.sqrt(6.0 / (input_dim + output_dim))
    u = jax.random.uniform(key, (input_dim, output_dim), dtype=jnp.float32)
    return u * 2.0 * init_range - init_range


def _reference_f32(x, weight, adj):
    x64 = np.asarray(x, dtype=np.float64)
    w64 = np.asarray(weight, dtype=np.float64)
    a64 = np.asarray(adj, dtype=np.float64)
    return np.maximum(a64 @ (x64 @ w64), 0.0)


def _reference_bf16(x, weight, adj):
    # Mirror the kernel's bf16 path: xw and adj rounded to bf16, f32/f64 accum.
    xw64 = np.asarray(x, np.float64) @ np.asarray(weight, np.float64)
    xw_q = np.asarray(
        jnp.asarray(xw64, jnp.float32).astype(jnp.bfloat16).astype(jnp.float32),
        np.float64)
    adj_q = np.asarray(
        jnp.asarray(adj).astype(jnp.bfloat16).astype(jnp.float32), np.float64)
    return np.maximum(adj_q @ xw_q, 0.0)


def _make_inputs(key, n, d_in, d_out):
    k_x, k_w, k_a = jax.random.split(key, 3)
    x = jax.random.normal(k_x, (n, d_in), dtype=jnp.float32)
    weight = glorot_init(k_w, d_in, d_out)
    a = jax.random.uniform(k_a, (n, n), dtype=jnp.float32)
    adj = (a + a.T) * 0.5   # symmetric non-negative dense "adjacency"
    return x, weight, adj


if __name__ == "__main__":
    key = jax.random.PRNGKey(0)
    k1, k2 = jax.random.split(key)

    # --- small, aligned test (f32 and bf16 paths) ------------------------
    x, weight, adj = _make_inputs(k1, 64, 32, 16)

    out = jax.block_until_ready(graph_conv_sparse(x, weight, adj))
    np.testing.assert_allclose(
        np.asarray(out, np.float64), _reference_f32(x, weight, adj),
        rtol=1e-3, atol=1e-3)

    out_bf16 = jax.block_until_ready(
        graph_conv_sparse(x, weight, adj, use_bf16=True))
    np.testing.assert_allclose(
        np.asarray(out_bf16, np.float64), _reference_bf16(x, weight, adj),
        rtol=1e-2, atol=1e-2)

    # --- larger, non-aligned test: padding + multi-step K accumulation ----
    x2, weight2, adj2 = _make_inputs(k2, 300, 48, 20)
    out2 = jax.block_until_ready(graph_conv_sparse(x2, weight2, adj2))
    np.testing.assert_allclose(
        np.asarray(out2, np.float64), _reference_f32(x2, weight2, adj2),
        rtol=1e-3, atol=1e-3)

    print("KERNEL_OK")
</pallas_src>

<mosaic_0001>
module attributes {stable_mosaic.version = 11 : i64} {
  func.func @_xw_kernel(%arg0: i32, %arg1: i32, %arg2: memref<128x32xf32, #tpu.memory_space<vmem>>, %arg3: memref<32x128xf32, #tpu.memory_space<vmem>>, %arg4: memref<128x128xf32, #tpu.memory_space<vmem>>) attributes {dimension_semantics = [#tpu.dimension_semantics<parallel>, #tpu.dimension_semantics<parallel>], iteration_bounds = array<i64: 1, 1>, scalar_prefetch = 0 : i64, scratch_operands = 0 : i64, tpu.core_type = #tpu.core_type<tc>, window_params = [{transform_indices = @transform_0, window_bounds = array<i64: 128, 32>}, {transform_indices = @transform_1, window_bounds = array<i64: 32, 128>}, {transform_indices = @transform_2, window_bounds = array<i64: 128, 128>}]} {
    %c0 = arith.constant 0 : index
    %c0_0 = arith.constant 0 : index
    %0 = vector.load %arg2[%c0, %c0_0] : memref<128x32xf32, #tpu.memory_space<vmem>>, vector<128x32xf32>
    %c0_1 = arith.constant 0 : index
    %c0_2 = arith.constant 0 : index
    %1 = vector.load %arg3[%c0_1, %c0_2] : memref<32x128xf32, #tpu.memory_space<vmem>>, vector<32x128xf32>
    %cst = arith.constant dense<0.000000e+00> : vector<128x128xf32>
    %2 = tpu.matmul %0, %1, %cst {dimension_numbers = #tpu.dot_dimension_numbers<[1], [0], [0], [1], [0, 0, 1, 1], [], []>, precision = #tpu.contract_precision<fp32>} : vector<128x32xf32>, vector<32x128xf32>, vector<128x128xf32> -> vector<128x128xf32>
    %c0_3 = arith.constant 0 : index
    %c0_4 = arith.constant 0 : index
    %3 = vector.load %arg4[%c0_3, %c0_4] : memref<128x128xf32, #tpu.memory_space<vmem>>, vector<128x128xf32>
    tpu.vector_store %arg4[%c0_3, %c0_4], %2 {strides = array<i32>} : memref<128x128xf32, #tpu.memory_space<vmem>>, vector<128x128xf32>,
    return
  }
  func.func @transform_0(%arg0: i32, %arg1: i32) -> (i32, i32) {
    %c0_i32 = arith.constant 0 : i32
    %c0_i32_0 = arith.constant 0 : i32
    return %arg0, %c0_i32 : i32, i32
  }
  func.func @transform_1(%arg0: i32, %arg1: i32) -> (i32, i32) {
    %c0_i32 = arith.constant 0 : i32
    %c0_i32_0 = arith.constant 0 : i32
    return %c0_i32, %arg1 : i32, i32
  }
  func.func @transform_2(%arg0: i32, %arg1: i32) -> (i32, i32) {
    %c0_i32 = arith.constant 0 : i32
    return %arg0, %arg1 : i32, i32
  }
}

</mosaic_0001>

<bundles_post_ra>
// kernel: tpu_custom_call.1
= control target key start
LH: loop header
LB: loop body
LE: loop exit
PB: predicated region body
PF: predicated region fallthrough
CT: control target
= control target key end

     0   :  { %vm32_vm0 = vcmask 261120   ;;  %s1224_s0 = inlined_call_operand.vmem [shape: f32[128,32], index: 0, kind: input, shape index: {}]   ;;  %s1225_s1 = inlined_call_operand.vmem [shape: f32[32,128], index: 1, kind: input, shape index: {}]   ;;  %s1226_s2 = inlined_call_operand.hbm [shape: f32[128,128], index: 2, kind: output, shape index: {}]  }
   0x1   :  { %v31_v0 = vld [vmem:[%s1225_s1 + $0x18] sm:$0xff]  ;;  %v30_v1 = vld [vmem:[%s1225_s1 + $0x10] sm:$0xff]  ;;  %v29_v2 = vld [vmem:[%s1225_s1 + $0x8] sm:$0xff] }
   0x2   :  { %v829_v3 = vand.u32 4294901760, %v31_v0  ;;  %v831_v4 = vand.u32 4294901760, %v30_v1  ;;  %v833_v5 = vand.u32 4294901760, %v29_v2  ;;  %v28_v6 = vld [vmem:[%s1225_s1] sm:$0xff]  ;;  %v21_v8 = vld [vmem:[%s1224_s0 + $0x48] sm:$0xff]  ;;  %v22_v13 = vld [vmem:[%s1224_s0 + $0x50] sm:$0xff] }
   0x3   :  { %v20_v7 = vld [vmem:[%s1224_s0 + $0x40] sm:$0xff]  ;;  %v844_v9 = vand.u32 4294901760, %v28_v6  ;;  %v61_v11 = vsel %vm32_vm0, %v21_v8, 0  ;;  %v64_v21 = vsel %vm32_vm0, %v22_v13, 0 }
   0x4   :  { %v58_v10 = vsel %vm32_vm0, %v20_v7, 0  ;;  %v12_v12 = vld [vmem:[%s1224_s0] sm:$0xff]  ;;  %765 = vmatpush.msra.mxu2 %v829_v3  ;;  %v243_v14 = vsub.f32 %v31_v0, %v829_v3  ;;  %v249_v16 = vsub.f32 %v30_v1, %v831_v4  ;;  %v255_v17 = vsub.f32 %v29_v2, %v833_v5  ;;  %94 = vmatpush.msra.mxu0 %v829_v3 }
   0x5   :  { %v856_v15 = vand.u32 4294901760, %v58_v10  ;;  %v862_v18 = vsub.f32 %v28_v6, %v844_v9  ;;  %v864_v19 = vand.u32 4294901760, %v61_v11  ;;  %v34_v20 = vsel %vm32_vm0, %v12_v12, 0 }
   0x6   :  { %7 = vsyncpa [#allocation3], 0  ;;  %766 = vmatpush.msra.mxu2 %v831_v4  ;;  %v244_v22 = vand.u32 4294901760, %v243_v14  ;;  %v250_v24 = vand.u32 4294901760, %v249_v16  ;;  %v256_v25 = vand.u32 4294901760, %v255_v17  ;;  %96 = vmatpush.msra.mxu0 %v831_v4  ;;  %v877_v28 = vand.u32 4294901760, %v34_v20 }
   0x7   :  { %v870_v23 = vsub.f32 %v58_v10, %v856_v15  ;;  %v262_v26 = vand.u32 4294901760, %v862_v18  ;;  %v875_v27 = vsub.f32 %v61_v11, %v864_v19  ;;  %v888_v35 = vand.u32 4294901760, %v64_v21  ;;  %v13_v36 = vld [vmem:[%s1224_s0 + $0x8] sm:$0xff]  ;;  %v14_v37 = vld [vmem:[%s1224_s0 + $0x10] sm:$0xff]  ;;  %v23_v46 = vld [vmem:[%s1224_s0 + $0x58] sm:$0xff]  ;;  %s753_s23 = sshll.u32 %s1226_s2, 4  ;;  %s754_s23 = int_to_ptr.hbm [resolvable:$true] %s753_s23 }
   0x8   :  { %767 = vmatpush.msra.mxu2 %v833_v5  ;;  %v245_v29 = vsub.f32 %v243_v14, %v244_v22  ;;  %v251_v31 = vsub.f32 %v249_v16, %v250_v24  ;;  %v257_v32 = vsub.f32 %v255_v17, %v256_v25  ;;  %98 = vmatpush.msra.mxu0 %v833_v5  ;;  %v37_v45 = vsel %vm32_vm0, %v13_v36, 0  ;;  %v15_v57 = vld [vmem:[%s1224_s0 + $0x18] sm:$0xff]  ;;  %v24_v1 = vld [vmem:[%s1224_s0 + $0x60] sm:$0xff]  ;;  %s803_s1 = smov 128   ;;  %s804_s24 = smov 8  }
   0x9   :  { %v167_v30 = vand.u32 4294901760, %v870_v23  ;;  %v263_v33 = vsub.f32 %v862_v18, %v262_v26  ;;  %v886_v34 = vsub.f32 %v34_v20, %v877_v28  ;;  %v175_v41 = vand.u32 4294901760, %v875_v27  ;;  %v16_v11 = vld [vmem:[%s1224_s0 + $0x20] sm:$0xff] }
   0xa   :  { %768 = vmatpush.msra.mxu2 %v844_v9  ;;  %v246_v38 = vand.u32 4294901760, %v245_v29  ;;  %v252_v40 = vand.u32 4294901760, %v251_v31  ;;  %100 = vmatpush.msra.mxu0 %v844_v9  ;;  %v258_v44 = vand.u32 4294901760, %v257_v32  ;;  %v40_v47 = vsel %vm32_vm0, %v14_v37, 0  ;;  %v26_v37 = vld [vmem:[%s1224_s0 + $0x70] sm:$0xff] }
   0xb   :  { %v168_v39 = vsub.f32 %v870_v23, %v167_v30  ;;  %v103_v42 = vand.u32 4294901760, %v886_v34  ;;  %v911_v49 = vand.u32 4294901760, %v37_v45  ;;  %v264_v50 = vand.u32 4294901760, %v263_v33 }
   0xc   :  { %345 = vmatpush.msrb.mxu2 %v243_v14  ;;  %568 = vmatpush.msrb.mxu0 %v244_v22  ;;  %v176_v51 = vsub.f32 %v875_v27, %v175_v41  ;;  %v917_v52 = vsub.f32 %v64_v21, %v888_v35  ;;  %v919_v53 = vand.u32 4294901760, %v40_v47  ;;  %v67_v56 = vsel %vm32_vm0, %v23_v46, 0  ;;  %v18_v46 = vld [vmem:[%s1224_s0 + $0x30] sm:$0xff] }
   0xd   :  { %769 = vmatpush.msra.mxu3 %v246_v38  ;;  %v169_v43 = vand.u32 4294901760, %v168_v39  ;;  %247 = vmatpush.msra.mxu1 %v246_v38  ;;  %v104_v48 = vsub.f32 %v886_v34, %v103_v42  ;;  %v922_v55 = vsub.f32 %v37_v45, %v911_v49  ;;  %v933_v62 = vand.u32 4294901760, %v67_v56 }
   0xe   :  { %348 = vmatpush.msrb.mxu2 %v249_v16  ;;  %572 = vmatpush.msrb.mxu0 %v250_v24  ;;  %v930_v59 = vsub.f32 %v40_v47, %v919_v53  ;;  %v177_v60 = vand.u32 4294901760, %v176_v51  ;;  %v183_v61 = vand.u32 4294901760, %v917_v52  ;;  %v43_v63 = vsel %vm32_vm0, %v15_v57, 0  ;;  %v27_v57 = vld [vmem:[%s1224_s0 + $0x78] sm:$0xff] }
   0xf   :  { %170 = vmatmul.f32.vlgmr.msra.gmra.mxu2 %v169_v43  ;;  %770 = vmatpush.msra.mxu3 %v252_v40  ;;  %v105_v54 = vand.u32 4294901760, %v104_v48  ;;  %v111_v58 = vand.u32 4294901760, %v922_v55  ;;  %v948_v7 = vand.u32 4294901760, %v43_v63  ;;  %v957_v10 = vsub.f32 %v67_v56, %v933_v62 }
  0x10   :  { %253 = vmatpush.msra.mxu1 %v252_v40  ;;  %351 = vmatpush.msrb.mxu2 %v255_v17  ;;  %v119_v6 = vand.u32 4294901760, %v930_v59  ;;  %v184_v8 = vsub.f32 %v917_v52, %v183_v61  ;;  %v46_v17 = vsel %vm32_vm0, %v16_v11, 0  ;;  %v76_v45 = vsel %vm32_vm0, %v26_v37, 0 }
  0x11   :  { %771 = vmatpush.msra.mxu3 %v258_v44  ;;  %576 = vmatpush.msrb.mxu0 %v256_v25  ;;  %v112_v0 = vsub.f32 %v922_v55, %v111_v58  ;;  %v969_v13 = vsub.f32 %v43_v63, %v948_v7  ;;  %v191_v16 = vand.u32 4294901760, %v957_v10  ;;  %v984_v21 = vand.u32 4294901760, %v46_v17  ;;  %v17_v25 = vld [vmem:[%s1224_s0 + $0x28] sm:$0xff] }
  0x12   :  { %259 = vmatpush.msra.mxu1 %v258_v44  ;;  %106 = vmatmul.f32.vlgmr.msra.gmra.mxu0 %v105_v54  ;;  %v120_v12 = vsub.f32 %v930_v59, %v119_v6  ;;  %v185_v14 = vand.u32 4294901760, %v184_v8  ;;  %v49_v36 = vsel %vm32_vm0, %v17_v25, 0  ;;  %v1031_v54 = vand.u32 4294901760, %v76_v45 }
  0x13   :  { %772 = vmatpush.msra.mxu3 %v264_v50  ;;  %354 = vmatpush.msrb.mxu2 %v862_v18  ;;  %v113_v2 = vand.u32 4294901760, %v112_v0  ;;  %v25_v18 = vld [vmem:[%s1224_s0 + $0x68] sm:$0xff]  ;;  %v127_v20 = vand.u32 4294901760, %v969_v13  ;;  %v192_v22 = vsub.f32 %v957_v10, %v191_v16  ;;  %v1000_v29 = vsub.f32 %v46_v17, %v984_v21 }
  0x14   :  { %299 = vmatmul.f32.vlgmr.msra.gmra.mxu3 %v856_v15  ;;  %265 = vmatpush.msra.mxu1 %v264_v50  ;;  %v1012_v40 = vand.u32 4294901760, %v49_v36  ;;  %v52_v56 = vsel %vm32_vm0, %v18_v46, 0  ;;  %v79_v8 = vsel %vm32_vm0, %v27_v57, 0 }
  0x15   :  { %449 = vmatpush.msrb.mxu3 %v829_v3  ;;  %267 = vmatmul.f32.vlgmr.msra.gmra.mxu1 %v877_v28  ;;  %v193_v31 = vand.u32 4294901760, %v192_v22  ;;  %v135_v39 = vand.u32 4294901760, %v1000_v29  ;;  %v1040_v0 = vand.u32 4294901760, %v52_v56 }
  0x16   :  { %659 = vmatpush.msrb.mxu1 %v829_v3  ;;  %580 = vmatpush.msrb.mxu0 %v262_v26  ;;  %v70_v3 = vsel %vm32_vm0, %v24_v1, 0  ;;  %v128_v26 = vsub.f32 %v969_v13, %v127_v20  ;;  %v1028_v48 = vsub.f32 %v49_v36, %v1012_v40 }
  0x17   :  { %178 = vmatmul.f32.gmra.mxu2 %v177_v60  ;;  %451 = vmatpush.msrb.mxu3 %v831_v4  ;;  %v136_v47 = vsub.f32 %v1000_v29, %v135_v39 }
  0x18   :  { %661 = vmatpush.msrb.mxu1 %v831_v4  ;;  %v973_v4 = vand.u32 4294901760, %v70_v3  ;;  %v129_v38 = vand.u32 4294901760, %v128_v26  ;;  %v143_v63 = vand.u32 4294901760, %v1028_v48 }
  0x19   :  { %453 = vmatpush.msrb.mxu3 %v833_v5  ;;  %v137_v60 = vand.u32 4294901760, %v136_v47 }
  0x1a   :  { %114 = vmatmul.f32.gmra.mxu0 %v113_v2  ;;  %663 = vmatpush.msrb.mxu1 %v833_v5  ;;  %v121_v5 = vand.u32 4294901760, %v120_v12  ;;  %v990_v24 = vsub.f32 %v70_v3, %v973_v4  ;;  %v1046_v2 = vsub.f32 %v76_v45, %v1031_v54  ;;  %v19_v3 = vld [vmem:[%s1224_s0 + $0x38] sm:$0xff]  ;;  %v144_v11 = vsub.f32 %v1028_v48, %v143_v63  ;;  %s802_s0 = smov [#allocation2]  }
  0x1b   :  { %455 = vmatpush.msrb.mxu3 %v844_v9  ;;  %v150_v12 = vsub.f32 %v52_v56, %v1040_v0  ;;  %s751_s20 = sshll.u32 %s802_s0, 4  ;;  %s752_s20 = int_to_ptr.vmem [resolvable:$true] %s751_s20 }
  0x1c   :  { %303 = vmatmul.f32.gmra.mxu3 %v864_v19  ;;  %665 = vmatpush.msrb.mxu1 %v844_v9  ;;  %v73_v9 = vsel %vm32_vm0, %v25_v18, 0  ;;  %v199_v32 = vand.u32 4294901760, %v990_v24  ;;  %v215_v17 = vand.u32 4294901760, %v1046_v2  ;;  %v1057_v18 = vand.u32 4294901760, %v79_v8 }
  0x1d   :  { %271 = vmatmul.f32.gmra.mxu1 %v911_v49  ;;  %v1003_v33 = vand.u32 4294901760, %v73_v9  ;;  %v145_v22 = vand.u32 4294901760, %v144_v11 }
  0x1e   :  { %v200_v43 = vsub.f32 %v990_v24, %v199_v32  ;;  %v216_v26 = vsub.f32 %v1046_v2, %v215_v17 }
  0x1f   :  { %186 = vmatmul.f32.gmra.mxu2 %v185_v14  ;;  %v1018_v44 = vsub.f32 %v73_v9, %v1003_v33  ;;  %v151_v9 = vand.u32 4294901760, %v150_v12 }
  0x20   :  { %v201_v50 = vand.u32 4294901760, %v200_v43 }
  0x21   :  { %v207_v51 = vand.u32 4294901760, %v1018_v44  ;;  %v152_v36 = vsub.f32 %v150_v12, %v151_v9 }
  0x22   :  { %122 = vmatmul.f32.gmra.mxu0 %v121_v5  ;;  %v55_v5 = vsel %vm32_vm0, %v19_v3, 0 }
  0x23   :  { %v208_v1 = vsub.f32 %v1018_v44, %v207_v51  ;;  %v157_v25 = vand.u32 4294901760, %v55_v5  ;;  %v153_v45 = vand.u32 4294901760, %v152_v36 }
  0x24   :  { %307 = vmatmul.f32.gmra.mxu3 %v888_v35 }
  0x25   :  { %275 = vmatmul.f32.gmra.mxu1 %v919_v53  ;;  %v209_v14 = vand.u32 4294901760, %v208_v1  ;;  %v158_v37 = vsub.f32 %v55_v5, %v157_v25 }
  0x27   :  { %194 = vmatmul.f32.gmra.mxu2 %v193_v31  ;;  %v1066_v31 = vsub.f32 %v79_v8, %v1057_v18  ;;  %v159_v46 = vand.u32 4294901760, %v158_v37 }
  0x29   :  { %v223_v43 = vand.u32 4294901760, %v1066_v31 }
  0x2a   :  { %130 = vmatmul.f32.gmra.mxu0 %v129_v38  ;;  %v217_v38 = vand.u32 4294901760, %v216_v26 }
  0x2b   :  { %v224_v47 = vsub.f32 %v1066_v31, %v223_v43 }
  0x2c   :  { %311 = vmatmul.f32.gmra.mxu3 %v933_v62 }
  0x2d   :  { %279 = vmatmul.f32.gmra.mxu1 %v948_v7  ;;  %v225_v56 = vand.u32 4294901760, %v224_v47 }
  0x2f   :  { %202 = vmatmul.f32.gmra.mxu2 %v201_v50  ;;  %v160_v50 = vsub.f32 %v158_v37, %v159_v46 }
  0x31   :  { %v161_v57 = vand.u32 4294901760, %v160_v50 }
  0x32   :  { %138 = vmatmul.f32.gmra.mxu0 %v137_v60 }
  0x34   :  { %315 = vmatmul.f32.gmra.mxu3 %v973_v4 }
  0x35   :  { %283 = vmatmul.f32.gmra.mxu1 %v984_v21 }
  0x37   :  { %210 = vmatmul.f32.gmra.mxu2 %v209_v14 }
  0x3a   :  { %146 = vmatmul.f32.gmra.mxu0 %v145_v22 }
  0x3c   :  { %319 = vmatmul.f32.gmra.mxu3 %v1003_v33 }
  0x3d   :  { %287 = vmatmul.f32.gmra.mxu1 %v1012_v40 }
  0x3f   :  { %218 = vmatmul.f32.gmra.mxu2 %v217_v38 }
  0x42   :  { %154 = vmatmul.f32.gmra.mxu0 %v153_v45 }
  0x44   :  { %323 = vmatmul.f32.gmra.mxu3 %v1031_v54 }
  0x45   :  { %291 = vmatmul.f32.gmra.mxu1 %v1040_v0 }
  0x47   :  { %226 = vmatmul.f32.gmra.mxu2 %v225_v56 }
  0x4a   :  { %162 = vmatmul.f32.gmra.mxu0 %v161_v57 }
  0x4c   :  { %327 = vmatmul.f32.gmra.mxu3 %v1057_v18 }
  0x4d   :  { %295 = vmatmul.f32.gmra.mxu1 %v157_v25 }
  0x4f   :  { %357 = vmatmul.f32.vlgmr.msrb.gmra.mxu2 %v886_v34 }
  0x52   :  { %582 = vmatmul.f32.vlgmr.msrb.gmra.mxu0 %v877_v28 }
  0x54   :  { %459 = vmatmul.f32.vlgmr.msrb.gmra.mxu3 %v103_v42 }
  0x55   :  { %667 = vmatmul.f32.vlgmr.msrb.gmra.mxu1 %v877_v28 }
  0x57   :  { %362 = vmatmul.f32.gmra.mxu2 %v922_v55 }
  0x5a   :  { %586 = vmatmul.f32.gmra.mxu0 %v911_v49 }
  0x5c   :  { %465 = vmatmul.f32.gmra.mxu3 %v111_v58 }
  0x5d   :  { %671 = vmatmul.f32.gmra.mxu1 %v911_v49 }
  0x5f   :  { %367 = vmatmul.f32.gmra.mxu2 %v930_v59 }
  0x62   :  { %590 = vmatmul.f32.gmra.mxu0 %v919_v53 }
  0x64   :  { %471 = vmatmul.f32.gmra.mxu3 %v119_v6 }
  0x65   :  { %675 = vmatmul.f32.gmra.mxu1 %v919_v53 }
  0x67   :  { %372 = vmatmul.f32.gmra.mxu2 %v969_v13 }
  0x6a   :  { %594 = vmatmul.f32.gmra.mxu0 %v948_v7 }
  0x6c   :  { %477 = vmatmul.f32.gmra.mxu3 %v127_v20 }
  0x6d   :  { %679 = vmatmul.f32.gmra.mxu1 %v948_v7 }
  0x6f   :  { %377 = vmatmul.f32.gmra.mxu2 %v1000_v29 }
  0x72   :  { %598 = vmatmul.f32.gmra.mxu0 %v984_v21 }
  0x74   :  { %483 = vmatmul.f32.gmra.mxu3 %v135_v39 }
  0x75   :  { %683 = vmatmul.f32.gmra.mxu1 %v984_v21 }
  0x77   :  { %382 = vmatmul.f32.gmra.mxu2 %v1028_v48 }
  0x7a   :  { %602 = vmatmul.f32.gmra.mxu0 %v1012_v40 }
  0x7c   :  { %489 = vmatmul.f32.gmra.mxu3 %v143_v63 }
  0x7d   :  { %687 = vmatmul.f32.gmra.mxu1 %v1012_v40 }
  0x7f   :  { %387 = vmatmul.f32.gmra.mxu2 %v150_v12 }
  0x82   :  { %606 = vmatmul.f32.gmra.mxu0 %v1040_v0 }
  0x84   :  { %495 = vmatmul.f32.gmra.mxu3 %v151_v9 }
  0x85   :  { %691 = vmatmul.f32.gmra.mxu1 %v1040_v0 }
  0x87   :  { %392 = vmatmul.f32.gmra.mxu2 %v158_v37 }
  0x8a   :  { %610 = vmatmul.f32.gmra.mxu0 %v157_v25 }
  0x8c   :  { %501 = vmatmul.f32.gmra.mxu3 %v159_v46 }
  0x8d   :  { %695 = vmatmul.f32.gmra.mxu1 %v157_v25 }
  0x8f   :  { %397 = vmatmul.f32.gmra.mxu2 %v870_v23  ;;  %v1110_v28 = vpop.f32.mrf.mxu0 }
  0x92   :  { %v171_v34 = vpop.f32.mrf.mxu2  ;;  %v1112_v42 = vpop.f32.mrf.mxu1  ;;  %614 = vmatmul.f32.gmra.mxu0 %v856_v15 }
  0x93   :  { %v269_v11 = vadd.f32 %v1112_v42, %v1110_v28 }
  0x94   :  { %507 = vmatmul.f32.gmra.mxu3 %v167_v30 }
  0x95   :  { %699 = vmatmul.f32.gmra.mxu1 %v856_v15 }
  0x97   :  { %402 = vmatmul.f32.gmra.mxu2 %v875_v27  ;;  %v300_v49 = vpop.f32.mrf.mxu3  ;;  %v1119_v53 = vpop.f32.mrf.mxu0 }
  0x98   :  { %v1121_v55 = vadd.f32 %v300_v49, %v171_v34 }
  0x9a   :  { %v179_v58 = vpop.f32.mrf.mxu2  ;;  %v1123_v59 = vpop.f32.mrf.mxu1  ;;  %618 = vmatmul.f32.gmra.mxu0 %v864_v19 }
  0x9b   :  { %v273_v26 = vadd.f32 %v1123_v59, %v1119_v53 }
  0x9c   :  { %513 = vmatmul.f32.gmra.mxu3 %v175_v41 }
  0x9d   :  { %703 = vmatmul.f32.gmra.mxu1 %v864_v19 }
  0x9f   :  { %407 = vmatmul.f32.gmra.mxu2 %v917_v52  ;;  %v304_v15 = vpop.f32.mrf.mxu3  ;;  %v1130_v23 = vpop.f32.mrf.mxu0 }
  0xa0   :  { %v1132_v30 = vadd.f32 %v304_v15, %v179_v58 }
  0xa2   :  { %v187_v6 = vpop.f32.mrf.mxu2  ;;  %v1134_v7 = vpop.f32.mrf.mxu1  ;;  %622 = vmatmul.f32.gmra.mxu0 %v888_v35 }
  0xa3   :  { %v277_v47 = vadd.f32 %v1134_v7, %v1130_v23 }
  0xa4   :  { %519 = vmatmul.f32.gmra.mxu3 %v183_v61 }
  0xa5   :  { %707 = vmatmul.f32.gmra.mxu1 %v888_v35 }
  0xa7   :  { %412 = vmatmul.f32.gmra.mxu2 %v957_v10  ;;  %v308_v19 = vpop.f32.mrf.mxu3  ;;  %v1141_v27 = vpop.f32.mrf.mxu0 }
  0xa8   :  { %v1143_v41 = vadd.f32 %v308_v19, %v187_v6 }
  0xaa   :  { %v195_v13 = vpop.f32.mrf.mxu2  ;;  %v1145_v20 = vpop.f32.mrf.mxu1  ;;  %626 = vmatmul.f32.gmra.mxu0 %v933_v62 }
  0xab   :  { %v281_v58 = vadd.f32 %v1145_v20, %v1141_v27 }
  0xac   :  { %525 = vmatmul.f32.gmra.mxu3 %v191_v16 }
  0xad   :  { %711 = vmatmul.f32.gmra.mxu1 %v933_v62 }
  0xaf   :  { %417 = vmatmul.f32.gmra.mxu2 %v990_v24  ;;  %v312_v35 = vpop.f32.mrf.mxu3  ;;  %v1152_v52 = vpop.f32.mrf.mxu0 }
  0xb0   :  { %v1154_v61 = vadd.f32 %v312_v35, %v195_v13 }
  0xb2   :  { %v203_v21 = vpop.f32.mrf.mxu2  ;;  %v1156_v29 = vpop.f32.mrf.mxu1  ;;  %630 = vmatmul.f32.gmra.mxu0 %v973_v4 }
  0xb4   :  { %531 = vmatmul.f32.gmra.mxu3 %v199_v32 }
  0xb5   :  { %715 = vmatmul.f32.gmra.mxu1 %v973_v4 }
  0xb7   :  { %422 = vmatmul.f32.gmra.mxu2 %v1018_v44  ;;  %v316_v62 = vpop.f32.mrf.mxu3  ;;  %v1163_v10 = vpop.f32.mrf.mxu0 }
  0xb8   :  { %v1165_v16 = vadd.f32 %v316_v62, %v203_v21  ;;  %v285_v21 = vadd.f32 %v1156_v29, %v1152_v52 }
  0xba   :  { %v211_v39 = vpop.f32.mrf.mxu2  ;;  %v1167_v40 = vpop.f32.mrf.mxu1  ;;  %634 = vmatmul.f32.gmra.mxu0 %v1003_v33 }
  0xbc   :  { %537 = vmatmul.f32.gmra.mxu3 %v207_v51 }
  0xbd   :  { %719 = vmatmul.f32.gmra.mxu1 %v1003_v33 }
  0xbf   :  { %427 = vmatmul.f32.gmra.mxu2 %v1046_v2  ;;  %v320_v4 = vpop.f32.mrf.mxu3  ;;  %v1174_v24 = vpop.f32.mrf.mxu0 }
  0xc0   :  { %v1176_v32 = vadd.f32 %v320_v4, %v211_v39 }
  0xc2   :  { %v219_v48 = vpop.f32.mrf.mxu2  ;;  %v1178_v60 = vpop.f32.mrf.mxu1  ;;  %638 = vmatmul.f32.gmra.mxu0 %v1031_v54 }
  0xc4   :  { %543 = vmatmul.f32.gmra.mxu3 %v215_v17 }
  0xc5   :  { %723 = vmatmul.f32.gmra.mxu1 %v1031_v54 }
  0xc7   :  { %432 = vmatmul.f32.gmra.mxu2 %v1066_v31  ;;  %v324_v33 = vpop.f32.mrf.mxu3  ;;  %v1185_v44 = vpop.f32.mrf.mxu0 }
  0xc8   :  { %v1187_v51 = vadd.f32 %v324_v33, %v219_v48 }
  0xca   :  { %v227_v63 = vpop.f32.mrf.mxu2  ;;  %v1189_v0 = vpop.f32.mrf.mxu1  ;;  %642 = vmatmul.f32.gmra.mxu0 %v1057_v18 }
  0xcc   :  { %549 = vmatmul.f32.gmra.mxu3 %v223_v43 }
  0xcd   :  { %727 = vmatmul.f32.gmra.mxu1 %v1057_v18 }
  0xcf   :  { %v328_v1 = vpop.f32.mrf.mxu3  ;;  %v583_v2 = vpop.f32.mrf.mxu0 }
  0xd0   :  { %v1195_v54 = vadd.f32 %v328_v1, %v227_v63  ;;  %v289_v1 = vadd.f32 %v1167_v40, %v1163_v10 }
  0xd2   :  { %v358_v8 = vpop.f32.mrf.mxu2  ;;  %v668_v3 = vpop.f32.mrf.mxu1 }
  0xd3   :  { %v359_v12 = vadd.f32 %v358_v8, %v269_v11 }
  0xd7   :  { %v460_v14 = vpop.f32.mrf.mxu3  ;;  %v587_v17 = vpop.f32.mrf.mxu0 }
  0xd8   :  { %v461_v5 = vadd.f32 %v460_v14, %v359_v12 }
  0xda   :  { %v363_v22 = vpop.f32.mrf.mxu2  ;;  %v584_v9 = vadd.f32 %v583_v2, %v461_v5  ;;  %v672_v25 = vpop.f32.mrf.mxu1 }
  0xdb   :  { %v364_v31 = vadd.f32 %v363_v22, %v273_v26 }
  0xdc   :  { %v669_v18 = vadd.f32 %v668_v3, %v584_v9 }
  0xde   :  { %731 = vst [vmem:[#allocation2] sm:$0xff] %v669_v18 }
  0xdf   :  { %v466_v36 = vpop.f32.mrf.mxu3  ;;  %v591_v37 = vpop.f32.mrf.mxu0 }
  0xe0   :  { %v467_v38 = vadd.f32 %v466_v36, %v364_v31  ;;  %v297_v31 = vadd.f32 %v1189_v0, %v1185_v44 }
  0xe2   :  { %v368_v43 = vpop.f32.mrf.mxu2  ;;  %v588_v45 = vadd.f32 %v587_v17, %v467_v38  ;;  %v676_v46 = vpop.f32.mrf.mxu1  ;;  %v293_v17 = vadd.f32 %v1178_v60, %v1174_v24 }
  0xe3   :  { %v369_v56 = vadd.f32 %v368_v43, %v277_v47 }
  0xe4   :  { %v673_v50 = vadd.f32 %v672_v25, %v588_v45 }
  0xe6   :  { %732 = vst [vmem:[#allocation2 + $0x8] sm:$0xff] %v673_v50 }
  0xe7   :  { %v472_v57 = vpop.f32.mrf.mxu3  ;;  %v595_v28 = vpop.f32.mrf.mxu0 }
  0xe8   :  { %v473_v34 = vadd.f32 %v472_v57, %v369_v56 }
  0xea   :  { %v373_v42 = vpop.f32.mrf.mxu2  ;;  %v592_v49 = vadd.f32 %v591_v37, %v473_v34  ;;  %v680_v53 = vpop.f32.mrf.mxu1 }
  0xeb   :  { %v374_v15 = vadd.f32 %v373_v42, %v281_v58 }
  0xec   :  { %v677_v59 = vadd.f32 %v676_v46, %v592_v49 }
  0xee   :  { %733 = vst [vmem:[#allocation2 + $0x10] sm:$0xff] %v677_v59 }
  0xef   :  { %v478_v6 = vpop.f32.mrf.mxu3  ;;  %v599_v19 = vpop.f32.mrf.mxu0 }
  0xf0   :  { %v479_v13 = vadd.f32 %v478_v6, %v374_v15 }
  0xf2   :  { %v378_v35 = vpop.f32.mrf.mxu2  ;;  %v596_v23 = vadd.f32 %v595_v28, %v479_v13  ;;  %v684_v7 = vpop.f32.mrf.mxu1 }
  0xf3   :  { %v379_v39 = vadd.f32 %v378_v35, %v285_v21 }
  0xf4   :  { %v681_v62 = vadd.f32 %v680_v53, %v596_v23 }
  0xf6   :  { %734 = vst [vmem:[#allocation2 + $0x18] sm:$0xff] %v681_v62 }
  0xf7   :  { %v484_v4 = vpop.f32.mrf.mxu3  ;;  %v603_v48 = vpop.f32.mrf.mxu0 }
  0xf8   :  { %v485_v33 = vadd.f32 %v484_v4, %v379_v39 }
  0xfa   :  { %v383_v63 = vpop.f32.mrf.mxu2  ;;  %v600_v27 = vadd.f32 %v599_v19, %v485_v33  ;;  %v688_v20 = vpop.f32.mrf.mxu1 }
  0xfb   :  { %v384_v8 = vadd.f32 %v383_v63, %v289_v1 }
  0xfc   :  { %v685_v2 = vadd.f32 %v684_v7, %v600_v27 }
  0xfe   :  { %735 = vst [vmem:[#allocation2 + $0x20] sm:$0xff] %v685_v2 }
  0xff   :  { %v490_v3 = vpop.f32.mrf.mxu3  ;;  %v607_v11 = vpop.f32.mrf.mxu0 }
 0x100   :  { %v491_v12 = vadd.f32 %v490_v3, %v384_v8 }
 0x102   :  { %v388_v14 = vpop.f32.mrf.mxu2  ;;  %v604_v52 = vadd.f32 %v603_v48, %v491_v12  ;;  %v692_v29 = vpop.f32.mrf.mxu1 }
 0x103   :  { %v389_v22 = vadd.f32 %v388_v14, %v293_v17 }
 0x104   :  { %v689_v5 = vadd.f32 %v688_v20, %v604_v52 }
 0x106   :  { %736 = vst [vmem:[#allocation2 + $0x28] sm:$0xff] %v689_v5 }
 0x107   :  { %v496_v9 = vpop.f32.mrf.mxu3  ;;  %v611_v25 = vpop.f32.mrf.mxu0 }
 0x108   :  { %v497_v26 = vadd.f32 %v496_v9, %v389_v22 }
 0x10a   :  { %v393_v18 = vpop.f32.mrf.mxu2  ;;  %v608_v10 = vadd.f32 %v607_v11, %v497_v26  ;;  %v696_v40 = vpop.f32.mrf.mxu1 }
 0x10b   :  { %v394_v37 = vadd.f32 %v393_v18, %v297_v31 }
 0x10c   :  { %v693_v36 = vadd.f32 %v692_v29, %v608_v10 }
 0x10e   :  { %737 = vst [vmem:[#allocation2 + $0x30] sm:$0xff] %v693_v36 }
 0x10f   :  { %v502_v38 = vpop.f32.mrf.mxu3  ;;  %v615_v43 = vpop.f32.mrf.mxu0 }
 0x110   :  { %v503_v45 = vadd.f32 %v502_v38, %v394_v37 }
 0x112   :  { %v398_v46 = vpop.f32.mrf.mxu2  ;;  %v612_v24 = vadd.f32 %v611_v25, %v503_v45  ;;  %v700_v60 = vpop.f32.mrf.mxu1 }
 0x113   :  { %v399_v50 = vadd.f32 %v398_v46, %v1121_v55 }
 0x114   :  { %v697_v47 = vadd.f32 %v696_v40, %v612_v24 }
 0x116   :  { %738 = vst [vmem:[#allocation2 + $0x38] sm:$0xff] %v697_v47 }
 0x117   :  { %v508_v56 = vpop.f32.mrf.mxu3  ;;  %v619_v57 = vpop.f32.mrf.mxu0 }
 0x118   :  { %v509_v28 = vadd.f32 %v508_v56, %v399_v50 }
 0x11a   :  { %v403_v34 = vpop.f32.mrf.mxu2  ;;  %v616_v42 = vadd.f32 %v615_v43, %v509_v28  ;;  %v704_v49 = vpop.f32.mrf.mxu1 }
 0x11b   :  { %v404_v0 = vadd.f32 %v403_v34, %v1132_v30 }
 0x11c   :  { %v701_v44 = vadd.f32 %v700_v60, %v616_v42 }
 0x11e   :  { %739 = vst [vmem:[#allocation2 + $0x40] sm:$0xff] %v701_v44 }
 0x11f   :  { %v514_v53 = vpop.f32.mrf.mxu3  ;;  %v623_v58 = vpop.f32.mrf.mxu0 }
 0x120   :  { %v515_v59 = vadd.f32 %v514_v53, %v404_v0 }
 0x122   :  { %v408_v15 = vpop.f32.mrf.mxu2  ;;  %v620_v6 = vadd.f32 %v619_v57, %v515_v59  ;;  %v708_v19 = vpop.f32.mrf.mxu1 }
 0x123   :  { %v409_v55 = vadd.f32 %v408_v15, %v1143_v41 }
 0x124   :  { %v705_v13 = vadd.f32 %v704_v49, %v620_v6 }
 0x126   :  { %740 = vst [vmem:[#allocation2 + $0x48] sm:$0xff] %v705_v13 }
 0x127   :  { %v520_v35 = vpop.f32.mrf.mxu3  ;;  %v627_v23 = vpop.f32.mrf.mxu0 }
 0x128   :  { %v521_v7 = vadd.f32 %v520_v35, %v409_v55 }
 0x12a   :  { %v413_v21 = vpop.f32.mrf.mxu2  ;;  %v624_v62 = vadd.f32 %v623_v58, %v521_v7  ;;  %v712_v39 = vpop.f32.mrf.mxu1 }
 0x12b   :  { %v414_v30 = vadd.f32 %v413_v21, %v1154_v61 }
 0x12c   :  { %v709_v4 = vadd.f32 %v708_v19, %v624_v62 }
 0x12e   :  { %741 = vst [vmem:[#allocation2 + $0x50] sm:$0xff] %v709_v4 }
 0x12f   :  { %v526_v48 = vpop.f32.mrf.mxu3  ;;  %v631_v63 = vpop.f32.mrf.mxu0 }
 0x130   :  { %v527_v33 = vadd.f32 %v526_v48, %v414_v30 }
 0x132   :  { %v418_v27 = vpop.f32.mrf.mxu2  ;;  %v628_v20 = vadd.f32 %v627_v23, %v527_v33  ;;  %v716_v1 = vpop.f32.mrf.mxu1 }
 0x133   :  { %v419_v41 = vadd.f32 %v418_v27, %v1165_v16 }
 0x134   :  { %v713_v2 = vadd.f32 %v712_v39, %v628_v20 }
 0x136   :  { %742 = vst [vmem:[#allocation2 + $0x58] sm:$0xff] %v713_v2 }
 0x137   :  { %v532_v8 = vpop.f32.mrf.mxu3  ;;  %v635_v14 = vpop.f32.mrf.mxu0 }
 0x138   :  { %v533_v3 = vadd.f32 %v532_v8, %v419_v41 }
 0x13a   :  { %v423_v11 = vpop.f32.mrf.mxu2  ;;  %v632_v12 = vadd.f32 %v631_v63, %v533_v3  ;;  %v720_v29 = vpop.f32.mrf.mxu1 }
 0x13b   :  { %v424_v61 = vadd.f32 %v423_v11, %v1176_v32 }
 0x13c   :  { %v717_v52 = vadd.f32 %v716_v1, %v632_v12 }
 0x13e   :  { %743 = vst [vmem:[#allocation2 + $0x60] sm:$0xff] %v717_v52 }
 0x13f   :  { %v538_v17 = vpop.f32.mrf.mxu3  ;;  %v639_v26 = vpop.f32.mrf.mxu0 }
 0x140   :  { %v539_v5 = vadd.f32 %v538_v17, %v424_v61 }
 0x142   :  { %v428_v22 = vpop.f32.mrf.mxu2  ;;  %v636_v9 = vadd.f32 %v635_v14, %v539_v5  ;;  %v724_v10 = vpop.f32.mrf.mxu1 }
 0x143   :  { %v429_v18 = vadd.f32 %v428_v22, %v1187_v51 }
 0x144   :  { %v721_v25 = vadd.f32 %v720_v29, %v636_v9 }
 0x146   :  { %744 = vst [vmem:[#allocation2 + $0x68] sm:$0xff] %v721_v25 }
 0x147   :  { %v544_v16 = vpop.f32.mrf.mxu3  ;;  %v643_v43 = vpop.f32.mrf.mxu0 }
 0x148   :  { %v545_v40 = vadd.f32 %v544_v16, %v429_v18 }
 0x14a   :  { %v640_v31 = vadd.f32 %v639_v26, %v545_v40  ;;  %v433_v36 = vpop.f32.mrf.mxu2  ;;  %v728_v51 = vpop.f32.mrf.mxu1 }
 0x14b   :  { %v434_v38 = vadd.f32 %v433_v36, %v1195_v54 }
 0x14c   :  { %v725_v37 = vadd.f32 %v724_v10, %v640_v31 }
 0x14e   :  { %745 = vst [vmem:[#allocation2 + $0x70] sm:$0xff] %v725_v37 }
 0x14f   :  { %v550_v32 = vpop.f32.mrf.mxu3 }
 0x150   :  { %v551_v45 = vadd.f32 %v550_v32, %v434_v38 }
 0x152   :  { %v644_v46 = vadd.f32 %v643_v43, %v551_v45 }
 0x154   :  { %v729_v24 = vadd.f32 %v728_v51, %v644_v46 }
 0x156   :  { %746 = vst [vmem:[#allocation2 + $0x78] sm:$0xff] %v729_v24 }
 0x157   :  { %759 = dma.vmem_to_hbm [thread:$0]  %s752_s20, 2048, %s754_s23, [#allocation3], %s803_s1, %s803_s1, %s804_s24  }
 0x158   :  { %800 = dma.done.wait [#allocation3], 2048  }
 0x159   :  { %801 = vsyncadd [#allocation3], 4294965248 }
 0x15a   :  { %764 = vsyncpa [#allocation3], 1 }

</bundles_post_ra>
